<compile_context>
chip_gen: v6e
topology: v6e:2x2x1
jax: 0.10.0
libtpu: 0.0.40
codegen_flags: <defaults>
</compile_context>

<pallas_src>
import functools

import jax
import jax.numpy as jnp
from jax.experimental import pallas as pl
from jax.experimental.pallas import tpu as pltpu

LANE = 128  # TPU lane width (last dim)


def _mlp_kernel(d_in, d_out, x_ref, w1_ref, b1_ref, w3_ref, b3_ref, o_ref, xp_ref):
    """One batch tile of relu(x @ w1 + b1) @ w3 + b3.

    x_ref : (Bt, d_in)  unpadded input tile.
    w*_ref: (128, 128)  zero-padded weights;  b*_ref: (1, 128) zero-padded biases.
    o_ref : (Bt, d_out) true-width output tile.
    xp_ref: (Bt, 128)   f32 VMEM scratch used to zero-pad x's feature lanes.
    """
    # Explicit zero pad of the feature dim: lanes d_in..127 are provably 0.
    xp_ref[...] = jnp.zeros_like(xp_ref)
    xp_ref[:, :d_in] = x_ref[...]
    x = xp_ref[...]

    h = jnp.dot(x, w1_ref[...], preferred_element_type=jnp.float32) + b1_ref[...]
    h = jnp.maximum(h, 0.0)                                           # F.relu
    y = jnp.dot(h, w3_ref[...], preferred_element_type=jnp.float32) + b3_ref[...]

    # Padded weight cols / bias lanes are zero, so lanes d_out..127 of y are 0;
    # store only the true d_out lanes (one masked vst, no HBM slice round trip).
    o_ref[...] = y[:, :d_out].astype(o_ref.dtype)


def _pad2d(a, rows, cols):
    return jnp.pad(a, ((0, rows - a.shape[0]), (0, cols - a.shape[1])))


def make_meinnetz_forward(w1, b1, w3, b3, *, block_b=1024):
    """Returns a jitted forward(x) for MeinNetz.

    Params are zero-padded to lane-dense (128,128)/(1,128) layouts ONCE here
    (outside the per-call path) and captured by the jitted forward.
    """
    d_in, d_hid = w1.shape
    d_out = w3.shape[1]
    assert max(d_in, d_hid, d_out) <= LANE

    # One-time padding (eager, at construction): no per-call pad HLOs.
    w1_p = _pad2d(w1, LANE, LANE)
    b1_p = _pad2d(b1.reshape(1, -1), 1, LANE)
    w3_p = _pad2d(w3, LANE, LANE)
    b3_p = _pad2d(b3.reshape(1, -1), 1, LANE)

    kernel = functools.partial(_mlp_kernel, d_in, d_out)

    def _small_batch(x):
        # Whole problem resident in VMEM: no grid / pipeline machinery at all.
        b = x.shape[0]
        vmem = pl.BlockSpec(memory_space=pltpu.MemorySpace.VMEM)
        return pl.pallas_call(
            kernel,
            out_shape=jax.ShapeDtypeStruct((b, d_out), x.dtype),
            in_specs=[vmem, vmem, vmem, vmem, vmem],
            out_specs=vmem,
            scratch_shapes=[pltpu.VMEM((b, LANE), jnp.float32)],
        )(x, w1_p, b1_p, w3_p, b3_p)

    def _large_batch(x):
        # 1-D batch grid; weights/biases stay resident (index_map -> (0, 0)).
        b = x.shape[0]
        grid_spec = pltpu.PrefetchScalarGridSpec(
            num_scalar_prefetch=0,
            grid=(pl.cdiv(b, block_b),),
            in_specs=[
                pl.BlockSpec((block_b, d_in), lambda i: (i, 0)),
                pl.BlockSpec((LANE, LANE), lambda i: (0, 0)),
                pl.BlockSpec((1, LANE), lambda i: (0, 0)),
                pl.BlockSpec((LANE, LANE), lambda i: (0, 0)),
                pl.BlockSpec((1, LANE), lambda i: (0, 0)),
            ],
            out_specs=pl.BlockSpec((block_b, d_out), lambda i: (i, 0)),
            scratch_shapes=[pltpu.VMEM((block_b, LANE), jnp.float32)],
        )
        return pl.pallas_call(
            kernel,
            out_shape=jax.ShapeDtypeStruct((b, d_out), x.dtype),
            grid_spec=grid_spec,
            compiler_params=pltpu.CompilerParams(
                dimension_semantics=("parallel",),
                # ~3 MiB live (x/out blocks double-buffered + resident weights
                # + scratch): well under every generation's scoped VMEM.
                vmem_limit_bytes=32 * 1024 * 1024,
            ),
        )(x, w1_p, b1_p, w3_p, b3_p)

    @jax.jit
    def forward(x):
        assert x.ndim == 2 and x.shape[1] == d_in
        if x.shape[0] <= block_b:
            return _small_batch(x)
        return _large_batch(x)

    return forward


def init_linear(key, fan_in, fan_out, dtype=jnp.float32):
    # Mimics PyTorch nn.Linear default init: U(-1/sqrt(fan_in), 1/sqrt(fan_in)).
    kw, kb = jax.random.split(key)
    bound = 1.0 / jnp.sqrt(jnp.asarray(fan_in, dtype))
    # Stored as (in, out) so the kernel does x @ W (== PyTorch x @ W_t.T).
    w = jax.random.uniform(kw, (fan_in, fan_out), dtype, -bound, bound)
    b = jax.random.uniform(kb, (1, fan_out), dtype, -bound, bound)
    return w, b


if __name__ == "__main__":
    key = jax.random.PRNGKey(0)
    k_x, k_l1, k_l2, k_l3, k_xl = jax.random.split(key, 5)

    D = 10
    w1, b1 = init_linear(k_l1, D, D)
    _w2, _b2 = init_linear(k_l2, D, D)  # lin2: defined in __init__, unused in forward()
    w3, b3 = init_linear(k_l3, D, D)

    forward = make_meinnetz_forward(w1, b1, w3, b3)

    def reference(x):
        return jnp.maximum(x @ w1 + b1, 0.0) @ w3 + b3

    # Small batch -> gridless whole-in-VMEM path.
    B = 8
    x = jax.random.normal(k_x, (B, D), jnp.float32)
    out = forward(x)
    jax.block_until_ready(out)
    assert out.shape == (B, D)
    assert jnp.allclose(out, reference(x), atol=1e-5, rtol=1e-5)

    # Larger batch -> 1-D batch-gridded path (weights resident across steps).
    BL = 4096
    xl = jax.random.normal(k_xl, (BL, D), jnp.float32)
    out_l = forward(xl)
    jax.block_until_ready(out_l)
    assert out_l.shape == (BL, D)
    assert jnp.allclose(out_l, reference(xl), atol=1e-5, rtol=1e-5)

    print("KERNEL_OK")
</pallas_src>

<mosaic_0001>
module attributes {stable_mosaic.version = 11 : i64} {
  func.func @_mlp_kernel(%arg0: memref<8x10xf32, #tpu.memory_space<vmem>>, %arg1: memref<128x128xf32, #tpu.memory_space<vmem>>, %arg2: memref<1x128xf32, #tpu.memory_space<vmem>>, %arg3: memref<128x128xf32, #tpu.memory_space<vmem>>, %arg4: memref<1x128xf32, #tpu.memory_space<vmem>>, %arg5: memref<8x10xf32, #tpu.memory_space<vmem>>, %arg6: memref<8x128xf32, #tpu.memory_space<vmem>>) attributes {dimension_semantics = [], scalar_prefetch = 0 : i64, scratch_operands = 1 : i64, tpu.core_type = #tpu.core_type<tc>} {
    %cst = arith.constant 0.000000e+00 : f32
    %0 = vector.broadcast %cst : f32 to vector<8x128xf32>
    %c0 = arith.constant 0 : index
    %c0_0 = arith.constant 0 : index
    %1 = vector.load %arg6[%c0, %c0_0] : memref<8x128xf32, #tpu.memory_space<vmem>>, vector<8x128xf32>
    tpu.vector_store %arg6[%c0, %c0_0], %0 {strides = array<i32>} : memref<8x128xf32, #tpu.memory_space<vmem>>, vector<8x128xf32>,
    %c0_1 = arith.constant 0 : index
    %c0_2 = arith.constant 0 : index
    %2 = vector.load %arg0[%c0_1, %c0_2] : memref<8x10xf32, #tpu.memory_space<vmem>>, vector<8x10xf32>
    %c0_3 = arith.constant 0 : index
    %c0_4 = arith.constant 0 : index
    %3 = vector.load %arg6[%c0_3, %c0_4] : memref<8x128xf32, #tpu.memory_space<vmem>>, vector<8x10xf32>
    tpu.vector_store %arg6[%c0_3, %c0_4], %2 {strides = array<i32>} : memref<8x128xf32, #tpu.memory_space<vmem>>, vector<8x10xf32>,
    %c0_5 = arith.constant 0 : index
    %c0_6 = arith.constant 0 : index
    %4 = vector.load %arg6[%c0_5, %c0_6] : memref<8x128xf32, #tpu.memory_space<vmem>>, vector<8x128xf32>
    %c0_7 = arith.constant 0 : index
    %c0_8 = arith.constant 0 : index
    %5 = vector.load %arg1[%c0_7, %c0_8] : memref<128x128xf32, #tpu.memory_space<vmem>>, vector<128x128xf32>
    %cst_9 = arith.constant dense<0.000000e+00> : vector<8x128xf32>
    %6 = tpu.matmul %4, %5, %cst_9 {dimension_numbers = #tpu.dot_dimension_numbers<[1], [0], [0], [1], [0, 0, 1, 1], [], []>} : vector<8x128xf32>, vector<128x128xf32>, vector<8x128xf32> -> vector<8x128xf32>
    %c0_10 = arith.constant 0 : index
    %c0_11 = arith.constant 0 : index
    %7 = vector.load %arg2[%c0_10, %c0_11] : memref<1x128xf32, #tpu.memory_space<vmem>>, vector<1x128xf32>
    %8 = vector.broadcast %7 : vector<1x128xf32> to vector<8x128xf32>
    %9 = arith.addf %6, %8 : vector<8x128xf32>
    %cst_12 = arith.constant 0.000000e+00 : f32
    %10 = vector.broadcast %cst_12 : f32 to vector<8x128xf32>
    %11 = arith.maximumf %9, %10 : vector<8x128xf32>
    %c0_13 = arith.constant 0 : index
    %c0_14 = arith.constant 0 : index
    %12 = vector.load %arg3[%c0_13, %c0_14] : memref<128x128xf32, #tpu.memory_space<vmem>>, vector<128x128xf32>
    %cst_15 = arith.constant dense<0.000000e+00> : vector<8x128xf32>
    %13 = tpu.matmul %11, %12, %cst_15 {dimension_numbers = #tpu.dot_dimension_numbers<[1], [0], [0], [1], [0, 0, 1, 1], [], []>} : vector<8x128xf32>, vector<128x128xf32>, vector<8x128xf32> -> vector<8x128xf32>
    %c0_16 = arith.constant 0 : index
    %c0_17 = arith.constant 0 : index
    %14 = vector.load %arg4[%c0_16, %c0_17] : memref<1x128xf32, #tpu.memory_space<vmem>>, vector<1x128xf32>
    %15 = vector.broadcast %14 : vector<1x128xf32> to vector<8x128xf32>
    %16 = arith.addf %13, %15 : vector<8x128xf32>
    %17 = vector.extract_strided_slice %16 {offsets = [0, 0], sizes = [8, 10], strides = [1, 1]} : vector<8x128xf32> to vector<8x10xf32>
    %c0_18 = arith.constant 0 : index
    %c0_19 = arith.constant 0 : index
    %18 = vector.load %arg5[%c0_18, %c0_19] : memref<8x10xf32, #tpu.memory_space<vmem>>, vector<8x10xf32>
    tpu.vector_store %arg5[%c0_18, %c0_19], %17 {strides = array<i32>} : memref<8x10xf32, #tpu.memory_space<vmem>>, vector<8x10xf32>,
    return
  }
}

</mosaic_0001>

<bundles_post_ra>
// kernel: forward.1
= control target key start
LH: loop header
LB: loop body
LE: loop exit
PB: predicated region body
PF: predicated region fallthrough
CT: control target
= control target key end

     0   :  { %10 = vsyncpa [#allocation4], 0  ;;  %s562_s0 = inlined_call_operand.hbm [shape: f32[8,10], index: 0, kind: input, shape index: {}]   ;;  %s563_s1 = inlined_call_operand.hbm [shape: f32[128,128], index: 1, kind: input, shape index: {}]   ;;  %s564_s2 = inlined_call_operand.vmem [shape: f32[1,128], index: 2, kind: input, shape index: {}]   ;;  %s565_s3 = inlined_call_operand.hbm [shape: f32[128,128], index: 3, kind: input, shape index: {}]   ;;  %s566_s4 = inlined_call_operand.vmem [shape: f32[1,128], index: 4, kind: input, shape index: {}]   ;;  %s567_s5 = inlined_call_operand.hbm [shape: f32[8,10], index: 5, kind: output, shape index: {}]  }
   0x1   :  { %11 = vsyncpa [#allocation7], 0 }
   0x2   :  { %12 = vsyncpa [#allocation5], 0  ;;  %s469_s18 = smov [#allocation6]  }
   0x3   :  { %s28_s19 = sshll.u32 %s469_s18, 4  ;;  %s29_s19 = int_to_ptr.vmem [resolvable:$true] %s28_s19 }
   0x4   :  { %s391_s20 = scalar_lea.vmem %s29_s19, 2048  ;;  %p396_p1 = scmp.lt.s32.totalorder %s29_s19, %s29_s19 }
   0x5   :  { %p392_p0 = scmp.ne.s32.totalorder %s29_s19, %s391_s20  ;;  %p397_p2 = scmp.lt.s32.totalorder %s391_s20, %s391_s20 }
   0x7   :  { %p398_p3 = por %p397_p2, %p396_p1 }
   0x9   :  { %p399_p4 = pnand %p398_p3, %p392_p0 }
   0xb   :  { %402 = shalt.err (!%p399_p4)
}
   0xc   :  { %s470_s21 = smov 128   ;;  %s471_s22 = smov 8  }
   0xd   :  { %34 = dma.hbm_to_vmem [thread:$0]  %s563_s1, 2048, %s29_s19, [#allocation7], %s470_s21, %s470_s21, %s471_s22  }
   0xe   :  { %s472_s25 = smov [#allocation3]   ;;  %s473_s27 = smov [#allocation8]  }
   0xf   :  { %s19_s26 = sshll.u32 %s472_s25, 4  ;;  %s42_s28 = sshll.u32 %s473_s27, 4  ;;  %s20_s26 = int_to_ptr.vmem [resolvable:$true] %s19_s26  ;;  %s43_s28 = int_to_ptr.vmem [resolvable:$true] %s42_s28 }
  0x10   :  { %s411_s29 = scalar_lea.vmem %s20_s26, 128  ;;  %p416_p6 = scmp.lt.s32.totalorder %s20_s26, %s20_s26 }
  0x11   :  { %p412_p5 = scmp.ne.s32.totalorder %s20_s26, %s411_s29  ;;  %p417_p7 = scmp.lt.s32.totalorder %s411_s29, %s411_s29 }
  0x13   :  { %p418_p8 = por %p417_p7, %p416_p6 }
  0x15   :  { %p419_p9 = pnand %p418_p8, %p412_p5 }
  0x17   :  { %422 = shalt.err (!%p419_p9)
}
  0x18   :  { %22 = dma.hbm_to_vmem [thread:$0]  %s562_s0, 128, %s20_s26, [#allocation4]  }
  0x19   :  { %s431_s7 = scalar_lea.vmem %s43_s28, 2048  ;;  %p436_p11 = scmp.lt.s32.totalorder %s43_s28, %s43_s28 }
  0x1a   :  { %p432_p10 = scmp.ne.s32.totalorder %s43_s28, %s431_s7  ;;  %p437_p12 = scmp.lt.s32.totalorder %s431_s7, %s431_s7 }
  0x1c   :  { %p438_p13 = por %p437_p12, %p436_p11 }
  0x1e   :  { %p439_p0 = pnand %p438_p13, %p432_p10 }
  0x20   :  { %442 = shalt.err (!%p439_p0)
}
  0x21   :  { %48 = dma.hbm_to_vmem [thread:$0]  %s565_s3, 2048, %s43_s28, [#allocation7], %s470_s21, %s470_s21, %s471_s22  }
  0x22   :  { %463 = dma.done.wait [#allocation4], 128  }
  0x23   :  { %464 = vsyncadd [#allocation4], 4294967168 }
  0x24   :  { %465 = dma.done.wait [#allocation7], 4096  }
  0x25   :  { %466 = vsyncadd [#allocation7], 4294963200  ;;  %v474_v0 = vmov 0.0   ;;  %vm475_vm0 = vmmov 0   ;;  %v80_v1 = vld [vmem:[#allocation6 + $0x78] sm:$0xff]  ;;  %v79_v2 = vld [vmem:[#allocation6 + $0x70] sm:$0xff] }
  0x26   :  { %305 = vmatprep.subr.mxu0 %v474_v0  ;;  %60 = vst [vmem:[#allocation2] sm:$0xff] %v474_v0  ;;  %337 = vmatprep.mubr.msk.f32.mxu0 %vm475_vm0, %v474_v0  ;;  %v78_v3 = vld [vmem:[#allocation6 + $0x68] sm:$0xff]  ;;  %vm62_vm1 = vcmask 80896   ;;  %v77_v4 = vld [vmem:[#allocation6 + $0x60] sm:$0xff]  ;;  %v61_v5 = vld [vmem:[#allocation3] sm:$0xff]  ;;  %s476_s11 = smov [#allocation9]  }
  0x27   :  { %340 = vmatprep.subr.mxu1 %v474_v0  ;;  %372 = vmatprep.mubr.msk.f32.mxu1 %vm475_vm0, %v474_v0  ;;  %v174_v6 = vld [vmem:[#allocation8 + $0x78] sm:$0xff]  ;;  %63 = vst.msk [vmem:[#allocation2] sm:$0xff] %vm62_vm1, %v61_v5  ;;  %v173_v8 = vld [vmem:[#allocation8 + $0x70] sm:$0xff]  ;;  %v172_v9 = vld [vmem:[#allocation8 + $0x68] sm:$0xff]  ;;  %s259_s12 = sshll.u32 %s476_s11, 4  ;;  %s260_s12 = int_to_ptr.vmem [resolvable:$true] %s259_s12 }
  0x28   :  { %306 = vmatpush3.msra.mxu0 %v80_v1  ;;  %v76_v7 = vld [vmem:[#allocation6 + $0x58] sm:$0xff]  ;;  %341 = vmatpush3.msra.mxu1 %v174_v6  ;;  %v75_v10 = vld [vmem:[#allocation6 + $0x50] sm:$0xff]  ;;  %v171_v11 = vld [vmem:[#allocation8 + $0x60] sm:$0xff]  ;;  %s443_s13 = scalar_lea.vmem %s260_s12, 128  ;;  %p448_p2 = scmp.lt.s32.totalorder %s260_s12, %s260_s12 }
  0x29   :  { %307 = vmatprep.subr.mxu0 %v474_v0  ;;  %342 = vmatprep.subr.mxu1 %v474_v0  ;;  %v74_v12 = vld [vmem:[#allocation6 + $0x48] sm:$0xff]  ;;  %v170_v13 = vld [vmem:[#allocation8 + $0x58] sm:$0xff]  ;;  %v73_v14 = vld [vmem:[#allocation6 + $0x40] sm:$0xff]  ;;  %p444_p1 = scmp.ne.s32.totalorder %s260_s12, %s443_s13  ;;  %p449_p3 = scmp.lt.s32.totalorder %s443_s13, %s443_s13 }
  0x2a   :  { %308 = vmatpush3.msra.mxu0 %v79_v2  ;;  %343 = vmatpush3.msra.mxu1 %v173_v8  ;;  %v169_v15 = vld [vmem:[#allocation8 + $0x50] sm:$0xff]  ;;  %v72_v16 = vld [vmem:[#allocation6 + $0x38] sm:$0xff]  ;;  %v168_v17 = vld [vmem:[#allocation8 + $0x48] sm:$0xff] }
  0x2b   :  { %309 = vmatprep.subr.mxu0 %v474_v0  ;;  %344 = vmatprep.subr.mxu1 %v474_v0  ;;  %v71_v18 = vld [vmem:[#allocation6 + $0x30] sm:$0xff]  ;;  %v167_v19 = vld [vmem:[#allocation8 + $0x40] sm:$0xff]  ;;  %v70_v20 = vld [vmem:[#allocation6 + $0x28] sm:$0xff]  ;;  %p450_p4 = por %p449_p3, %p448_p2 }
  0x2c   :  { %310 = vmatpush3.msra.mxu0 %v78_v3  ;;  %345 = vmatpush3.msra.mxu1 %v172_v9  ;;  %v166_v21 = vld [vmem:[#allocation8 + $0x38] sm:$0xff]  ;;  %v69_v22 = vld [vmem:[#allocation6 + $0x20] sm:$0xff]  ;;  %v165_v23 = vld [vmem:[#allocation8 + $0x30] sm:$0xff] }
  0x2d   :  { %311 = vmatprep.subr.mxu0 %v474_v0  ;;  %346 = vmatprep.subr.mxu1 %v474_v0  ;;  %v68_v24 = vld [vmem:[#allocation6 + $0x18] sm:$0xff]  ;;  %v164_v25 = vld [vmem:[#allocation8 + $0x28] sm:$0xff]  ;;  %v67_v26 = vld [vmem:[#allocation6 + $0x10] sm:$0xff]  ;;  %p451_p5 = pnand %p450_p4, %p444_p1 }
  0x2e   :  { %312 = vmatpush3.msra.mxu0 %v77_v4  ;;  %347 = vmatpush3.msra.mxu1 %v171_v11  ;;  %v163_v27 = vld [vmem:[#allocation8 + $0x20] sm:$0xff]  ;;  %v66_v28 = vld [vmem:[#allocation6 + $0x8] sm:$0xff]  ;;  %v162_v29 = vld [vmem:[#allocation8 + $0x18] sm:$0xff] }
  0x2f   :  { %313 = vmatprep.subr.mxu0 %v474_v0  ;;  %348 = vmatprep.subr.mxu1 %v474_v0  ;;  %v65_v30 = vld [vmem:[#allocation6] sm:$0xff]  ;;  %v64_v31 = vld [vmem:[#allocation2] sm:$0xff]  ;;  %v160_v33 = vld [vmem:[#allocation8 + $0x8] sm:$0xff] }
  0x30   :  { %314 = vmatpush3.msra.mxu0 %v76_v7  ;;  %349 = vmatpush3.msra.mxu1 %v170_v13  ;;  %v161_v32 = vld [vmem:[#allocation8 + $0x10] sm:$0xff]  ;;  %v159_v34 = vld [vmem:[#allocation8] sm:$0xff] }
  0x31   :  { %315 = vmatprep.subr.mxu0 %v474_v0  ;;  %350 = vmatprep.subr.mxu1 %v474_v0  ;;  %v269_v35 = vld [vmem:[%s564_s2] ss:$0 sm:$0xff] }
  0x32   :  { %316 = vmatpush3.msra.mxu0 %v75_v10  ;;  %351 = vmatpush3.msra.mxu1 %v169_v15  ;;  %v270_v40 = vld [vmem:[%s566_s4] ss:$0 sm:$0xff] }
  0x33   :  { %317 = vmatprep.subr.mxu0 %v474_v0  ;;  %352 = vmatprep.subr.mxu1 %v474_v0 }
  0x34   :  { %318 = vmatpush3.msra.mxu0 %v74_v12  ;;  %353 = vmatpush3.msra.mxu1 %v168_v17 }
  0x35   :  { %319 = vmatprep.subr.mxu0 %v474_v0  ;;  %354 = vmatprep.subr.mxu1 %v474_v0 }
  0x36   :  { %320 = vmatpush3.msra.mxu0 %v73_v14  ;;  %355 = vmatpush3.msra.mxu1 %v167_v19 }
  0x37   :  { %321 = vmatprep.subr.mxu0 %v474_v0  ;;  %356 = vmatprep.subr.mxu1 %v474_v0 }
  0x38   :  { %322 = vmatpush3.msra.mxu0 %v72_v16  ;;  %357 = vmatpush3.msra.mxu1 %v166_v21 }
  0x39   :  { %323 = vmatprep.subr.mxu0 %v474_v0  ;;  %358 = vmatprep.subr.mxu1 %v474_v0 }
  0x3a   :  { %324 = vmatpush3.msra.mxu0 %v71_v18  ;;  %359 = vmatpush3.msra.mxu1 %v165_v23 }
  0x3b   :  { %325 = vmatprep.subr.mxu0 %v474_v0  ;;  %360 = vmatprep.subr.mxu1 %v474_v0 }
  0x3c   :  { %326 = vmatpush3.msra.mxu0 %v70_v20  ;;  %361 = vmatpush3.msra.mxu1 %v164_v25 }
  0x3d   :  { %327 = vmatprep.subr.mxu0 %v474_v0  ;;  %362 = vmatprep.subr.mxu1 %v474_v0 }
  0x3e   :  { %328 = vmatpush3.msra.mxu0 %v69_v22  ;;  %363 = vmatpush3.msra.mxu1 %v163_v27 }
  0x3f   :  { %329 = vmatprep.subr.mxu0 %v474_v0  ;;  %364 = vmatprep.subr.mxu1 %v474_v0 }
  0x40   :  { %330 = vmatpush3.msra.mxu0 %v68_v24  ;;  %365 = vmatpush3.msra.mxu1 %v162_v29 }
  0x41   :  { %331 = vmatprep.subr.mxu0 %v474_v0  ;;  %366 = vmatprep.subr.mxu1 %v474_v0 }
  0x42   :  { %332 = vmatpush3.msra.mxu0 %v67_v26  ;;  %367 = vmatpush3.msra.mxu1 %v161_v32 }
  0x43   :  { %333 = vmatprep.subr.mxu0 %v474_v0  ;;  %368 = vmatprep.subr.mxu1 %v474_v0 }
  0x44   :  { %334 = vmatpush3.msra.mxu0 %v66_v28  ;;  %369 = vmatpush3.msra.mxu1 %v160_v33 }
  0x45   :  { %335 = vmatprep.subr.mxu0 %v474_v0  ;;  %370 = vmatprep.subr.mxu1 %v474_v0 }
  0x46   :  { %336 = vmatpush3.msra.mxu0 %v65_v30  ;;  %371 = vmatpush3.msra.mxu1 %v159_v34 }
  0x47   :  { %338 = vmatmul.mubr.f32.vlgmr.msra.gmra.mxu0 %v64_v31 }
 0x107   :  { %v154_v36 = vpop.f32.mrf.mxu0 }
 0x108   :  { %v155_v37 = vadd.f32 %v269_v35, %v154_v36 }
 0x109   :  { %v339_v38 = vpop.f32.mrf.mxu0 }
 0x10a   :  { %v158_v39 = vmax.f32 %v155_v37, 0.0 }
 0x10c   :  { %373 = vmatmul.mubr.f32.vlgmr.msra.gmra.mxu1 %v158_v39 }
 0x1cc   :  { %v248_v41 = vpop.f32.mrf.mxu1 }
 0x1cd   :  { %v249_v42 = vadd.f32 %v270_v40, %v248_v41 }
 0x1ce   :  { %v374_v43 = vpop.f32.mrf.mxu1 }
 0x1cf   :  { %252 = vst.msk [vmem:[#allocation9] sm:$0xff] %vm62_vm1, %v249_v42 }
 0x1d0   :  { %454 = shalt.err (!%p451_p5)
}
 0x1d1   :  { %262 = dma.vmem_to_hbm [thread:$0]  %s260_s12, 128, %s567_s5, [#allocation5]  }
 0x1d2   :  { %467 = dma.done.wait [#allocation5], 128  }
 0x1d3   :  { %468 = vsyncadd [#allocation5], 4294967168 }
 0x1d4   :  { %266 = vsyncpa [#allocation4], 1 }
 0x1d5   :  { %267 = vsyncpa [#allocation7], 1 }
 0x1d6   :  { %268 = vsyncpa [#allocation5], 1 }

</bundles_post_ra>
